<compile_context>
chip_gen: v5e
topology: v5e:2x2
jax: 0.10.0
libtpu: 0.0.40
codegen_flags: <defaults>
</compile_context>

<pallas_src>
import functools

import jax
import jax.numpy as jnp
from jax.experimental import pallas as pl
from jax.experimental.pallas import tpu as pltpu


def _se_kernel(x_ref, w1_ref, b1_ref, w2_ref, b2_ref, o_ref, acc_ref, *, inv_hw):
    """x_ref: (TB, C, THW); weights full; o_ref: (TB, C); acc_ref: (TB, C) f32."""
    hw_idx = pl.program_id(1)

    @pl.when(hw_idx == 0)
    def _init():
        acc_ref[...] = jnp.zeros_like(acc_ref)

    # Partial global-average-pool: lane reduce over the HW tile, accumulated
    # in f32 without materializing an f32 copy of the input tile.
    acc_ref[...] += jnp.sum(x_ref[...], axis=-1, dtype=jnp.float32)

    @pl.when(hw_idx == pl.num_programs(1) - 1)
    def _finalize():
        pooled = acc_ref[...] * inv_hw                                   # (TB, C) f32

        # fc1 (1x1 conv, C -> Cr) + ReLU. Cr is tiny; FLOPs are noise either way.
        h = jnp.dot(pooled, w1_ref[...], preferred_element_type=jnp.float32)
        h = jnp.maximum(h + b1_ref[...], 0.0)                            # (TB, Cr)

        # fc2 (1x1 conv, Cr -> C) + sigmoid, all in f32; cast only at store.
        y = jnp.dot(h, w2_ref[...], preferred_element_type=jnp.float32)
        y = jax.nn.sigmoid(y + b2_ref[...])                              # (TB, C)

        o_ref[...] = y.astype(o_ref.dtype)


def _pick_hw_tile(hw, c, itemsize, budget):
    """Largest HW tile that is a multiple of 128 dividing HW (or full HW)."""
    if c * hw * itemsize <= budget or hw % 128 != 0:
        return hw
    best = 128
    d = 128
    while d <= hw:
        if hw % d == 0 and c * d * itemsize <= budget:
            best = d
        d += 128
    return best


def _pick_batch_tile(n, c, thw, itemsize, budget):
    """Largest batch tile dividing N whose input block fits the budget."""
    tb = n
    while tb > 1 and (n % tb != 0 or tb * c * thw * itemsize > budget):
        tb -= 1
    return tb


def se_weight_module(x, w1, b1, w2, b2, *, vmem_block_budget=4 * 1024 * 1024):
    """x: (N, C, H, W); w1: (C, Cr); b1: (1, Cr); w2: (Cr, C); b2: (1, C).

    Weight layout: w1/w2 are the (in, out) transposes of the PyTorch Conv2d
    kernels so the FC path is pooled @ w1 and hidden @ w2.
    Returns (N, C, 1, 1), matching the PyTorch module.
    """
    N, C, H, W = x.shape
    HW = H * W
    Cr = w1.shape[1]
    itemsize = x.dtype.itemsize

    # Lane-dense layout: do the reshape in the wrapper, never in the kernel.
    x2 = x.reshape(N, C, HW)

    thw = _pick_hw_tile(HW, C, itemsize, vmem_block_budget)
    tb = _pick_batch_tile(N, C, thw, itemsize, vmem_block_budget)
    grid = (N // tb, HW // thw)

    kernel = functools.partial(_se_kernel, inv_hw=1.0 / HW)

    wbytes = (C * Cr + Cr + Cr * C + C) * w1.dtype.itemsize
    cost = pl.CostEstimate(
        flops=N * C * HW + 4 * N * C * Cr + N * (C + Cr),
        transcendentals=N * C,
        bytes_accessed=N * C * HW * itemsize + wbytes + N * C * itemsize,
    )

    out2d = pl.pallas_call(
        kernel,
        out_shape=jax.ShapeDtypeStruct((N, C), x.dtype),
        grid_spec=pltpu.PrefetchScalarGridSpec(
            num_scalar_prefetch=0,
            grid=grid,
            in_specs=[
                pl.BlockSpec((tb, C, thw), lambda b, h: (b, 0, h)),
                pl.BlockSpec((C, Cr), lambda b, h: (0, 0)),
                pl.BlockSpec((1, Cr), lambda b, h: (0, 0)),
                pl.BlockSpec((Cr, C), lambda b, h: (0, 0)),
                pl.BlockSpec((1, C), lambda b, h: (0, 0)),
            ],
            # Same output block across the HW (reduction) axis -> accumulator
            # pattern; finalize writes a lane-dense 2-D (TB, C) block.
            out_specs=pl.BlockSpec((tb, C), lambda b, h: (b, 0)),
            scratch_shapes=[pltpu.VMEM((tb, C), jnp.float32)],
        ),
        compiler_params=pltpu.CompilerParams(
            dimension_semantics=("parallel", "arbitrary"),
        ),
        cost_estimate=cost,
    )(x2, w1, b1, w2, b2)

    # Match PyTorch's (N, C, 1, 1) output layout outside the kernel.
    return out2d.reshape(N, C, 1, 1)


def se_weight_reference(x, w1, b1, w2, b2):
    """Pure-JAX reference matching PyTorch semantics."""
    pooled = jnp.mean(x.astype(jnp.float32), axis=(2, 3))        # (N, C)
    h = jnp.maximum(pooled @ w1 + b1, 0.0)                        # (N, Cr)
    y = jax.nn.sigmoid(h @ w2 + b2)                               # (N, C)
    return y[:, :, None, None].astype(x.dtype)


if __name__ == "__main__":
    # Small but valid config: channels must be divisible by reduction(=16).
    N, C, H, W = 2, 64, 16, 16
    reduction = 16
    Cr = C // reduction

    key = jax.random.PRNGKey(0)
    kx, k1, kb1, k2, kb2 = jax.random.split(key, 5)

    x = jax.random.normal(kx, (N, C, H, W), dtype=jnp.float32)

    # Deterministic parameter init (synthetic weights; shapes from __init__).
    w1 = jax.random.normal(k1, (C, Cr), dtype=jnp.float32) * 0.1   # fc1 weight^T
    b1 = jax.random.normal(kb1, (1, Cr), dtype=jnp.float32) * 0.1  # fc1 bias
    w2 = jax.random.normal(k2, (Cr, C), dtype=jnp.float32) * 0.1   # fc2 weight^T
    b2 = jax.random.normal(kb2, (1, C), dtype=jnp.float32) * 0.1   # fc2 bias

    out = se_weight_module(x, w1, b1, w2, b2)
    out = jax.block_until_ready(out)

    ref = se_weight_reference(x, w1, b1, w2, b2)
    assert out.shape == (N, C, 1, 1)
    assert jnp.allclose(out, ref, atol=1e-5, rtol=1e-5)

    print("KERNEL_OK")
</pallas_src>

<mosaic_0001>
module attributes {stable_mosaic.version = 11 : i64} {
  func.func @_se_kernel(%arg0: i32, %arg1: i32, %arg2: memref<2x64x256xf32, #tpu.memory_space<vmem>>, %arg3: memref<64x4xf32, #tpu.memory_space<vmem>>, %arg4: memref<1x4xf32, #tpu.memory_space<vmem>>, %arg5: memref<4x64xf32, #tpu.memory_space<vmem>>, %arg6: memref<1x64xf32, #tpu.memory_space<vmem>>, %arg7: memref<2x64xf32, #tpu.memory_space<vmem>>, %arg8: memref<2x64xf32, #tpu.memory_space<vmem>>) attributes {dimension_semantics = [#tpu.dimension_semantics<parallel>, #tpu.dimension_semantics<arbitrary>], iteration_bounds = array<i64: 1, 1>, scalar_prefetch = 0 : i64, scratch_operands = 1 : i64, tpu.core_type = #tpu.core_type<tc>, window_params = [{transform_indices = @transform_0, window_bounds = array<i64: 2, 64, 256>}, {pipeline_mode = #tpu.pipeline_mode<synchronous>, transform_indices = @transform_1, window_bounds = array<i64: 64, 4>}, {pipeline_mode = #tpu.pipeline_mode<synchronous>, transform_indices = @transform_2, window_bounds = array<i64: 1, 4>}, {pipeline_mode = #tpu.pipeline_mode<synchronous>, transform_indices = @transform_3, window_bounds = array<i64: 4, 64>}, {pipeline_mode = #tpu.pipeline_mode<synchronous>, transform_indices = @transform_4, window_bounds = array<i64: 1, 64>}, {transform_indices = @transform_5, window_bounds = array<i64: 2, 64>}]} {
    %c0_i32 = arith.constant 0 : i32
    %0 = arith.cmpi eq, %arg1, %c0_i32 : i32
    %1 = arith.extui %0 : i1 to i32
    %c0_i32_0 = arith.constant 0 : i32
    %2 = arith.cmpi ne, %1, %c0_i32_0 : i32
    scf.if %2 {
      %cst_9 = arith.constant 0.000000e+00 : f32
      %11 = vector.broadcast %cst_9 : f32 to vector<2x64xf32>
      %c0_10 = arith.constant 0 : index
      %c0_11 = arith.constant 0 : index
      %12 = vector.load %arg8[%c0_10, %c0_11] : memref<2x64xf32, #tpu.memory_space<vmem>>, vector<2x64xf32>
      tpu.vector_store %arg8[%c0_10, %c0_11], %11 {strides = array<i32>} : memref<2x64xf32, #tpu.memory_space<vmem>>, vector<2x64xf32>,
    } else {
    }
    %c0 = arith.constant 0 : index
    %c0_1 = arith.constant 0 : index
    %3 = vector.load %arg8[%c0, %c0_1] : memref<2x64xf32, #tpu.memory_space<vmem>>, vector<2x64xf32>
    %c0_2 = arith.constant 0 : index
    %c0_3 = arith.constant 0 : index
    %c0_4 = arith.constant 0 : index
    %4 = vector.load %arg2[%c0_2, %c0_3, %c0_4] : memref<2x64x256xf32, #tpu.memory_space<vmem>>, vector<2x64x256xf32>
    %cst = arith.constant dense<0.000000e+00> : vector<2x64xf32>
    %5 = vector.multi_reduction <add>, %4, %cst [2] : vector<2x64x256xf32> to vector<2x64xf32>
    %6 = arith.addf %3, %5 : vector<2x64xf32>
    %c0_5 = arith.constant 0 : index
    %c0_6 = arith.constant 0 : index
    %7 = vector.load %arg8[%c0_5, %c0_6] : memref<2x64xf32, #tpu.memory_space<vmem>>, vector<2x64xf32>
    tpu.vector_store %arg8[%c0_5, %c0_6], %6 {strides = array<i32>} : memref<2x64xf32, #tpu.memory_space<vmem>>, vector<2x64xf32>,
    %c0_i32_7 = arith.constant 0 : i32
    %8 = arith.cmpi eq, %arg1, %c0_i32_7 : i32
    %9 = arith.extui %8 : i1 to i32
    %c0_i32_8 = arith.constant 0 : i32
    %10 = arith.cmpi ne, %9, %c0_i32_8 : i32
    scf.if %10 {
      %c0_9 = arith.constant 0 : index
      %c0_10 = arith.constant 0 : index
      %11 = vector.load %arg8[%c0_9, %c0_10] : memref<2x64xf32, #tpu.memory_space<vmem>>, vector<2x64xf32>
      %cst_11 = arith.constant 3.906250e-03 : f32
      %12 = vector.broadcast %cst_11 : f32 to vector<2x64xf32>
      %13 = arith.mulf %11, %12 : vector<2x64xf32>
      %c0_12 = arith.constant 0 : index
      %c0_13 = arith.constant 0 : index
      %14 = vector.load %arg3[%c0_12, %c0_13] : memref<64x4xf32, #tpu.memory_space<vmem>>, vector<64x4xf32>
      %cst_14 = arith.constant dense<0.000000e+00> : vector<2x4xf32>
      %15 = tpu.matmul %13, %14, %cst_14 {dimension_numbers = #tpu.dot_dimension_numbers<[1], [0], [0], [1], [0, 0, 1, 1], [], []>} : vector<2x64xf32>, vector<64x4xf32>, vector<2x4xf32> -> vector<2x4xf32>
      %c0_15 = arith.constant 0 : index
      %c0_16 = arith.constant 0 : index
      %16 = vector.load %arg4[%c0_15, %c0_16] : memref<1x4xf32, #tpu.memory_space<vmem>>, vector<1x4xf32>
      %17 = vector.broadcast %16 : vector<1x4xf32> to vector<2x4xf32>
      %18 = arith.addf %15, %17 : vector<2x4xf32>
      %cst_17 = arith.constant 0.000000e+00 : f32
      %19 = vector.broadcast %cst_17 : f32 to vector<2x4xf32>
      %20 = arith.maximumf %18, %19 : vector<2x4xf32>
      %c0_18 = arith.constant 0 : index
      %c0_19 = arith.constant 0 : index
      %21 = vector.load %arg5[%c0_18, %c0_19] : memref<4x64xf32, #tpu.memory_space<vmem>>, vector<4x64xf32>
      %cst_20 = arith.constant dense<0.000000e+00> : vector<2x64xf32>
      %22 = tpu.matmul %20, %21, %cst_20 {dimension_numbers = #tpu.dot_dimension_numbers<[1], [0], [0], [1], [0, 0, 1, 1], [], []>} : vector<2x4xf32>, vector<4x64xf32>, vector<2x64xf32> -> vector<2x64xf32>
      %c0_21 = arith.constant 0 : index
      %c0_22 = arith.constant 0 : index
      %23 = vector.load %arg6[%c0_21, %c0_22] : memref<1x64xf32, #tpu.memory_space<vmem>>, vector<1x64xf32>
      %24 = vector.broadcast %23 : vector<1x64xf32> to vector<2x64xf32>
      %25 = arith.addf %22, %24 : vector<2x64xf32>
      %26 = arith.negf %25 : vector<2x64xf32>
      %27 = math.exp %26 : vector<2x64xf32>
      %cst_23 = arith.constant 1.000000e+00 : f32
      %28 = vector.broadcast %cst_23 : f32 to vector<2x64xf32>
      %29 = arith.addf %28, %27 : vector<2x64xf32>
      %30 = arith.divf %28, %29 : vector<2x64xf32>
      %c0_24 = arith.constant 0 : index
      %c0_25 = arith.constant 0 : index
      %31 = vector.load %arg7[%c0_24, %c0_25] : memref<2x64xf32, #tpu.memory_space<vmem>>, vector<2x64xf32>
      tpu.vector_store %arg7[%c0_24, %c0_25], %30 {strides = array<i32>} : memref<2x64xf32, #tpu.memory_space<vmem>>, vector<2x64xf32>,
    } else {
    }
    return
  }
  func.func @transform_0(%arg0: i32, %arg1: i32) -> (i32, i32, i32) {
    %c0_i32 = arith.constant 0 : i32
    %c0_i32_0 = arith.constant 0 : i32
    return %arg0, %c0_i32, %arg1 : i32, i32, i32
  }
  func.func @transform_1(%arg0: i32, %arg1: i32) -> (i32, i32) {
    %c0_i32 = arith.constant 0 : i32
    %c0_i32_0 = arith.constant 0 : i32
    %c0_i32_1 = arith.constant 0 : i32
    return %c0_i32, %c0_i32_0 : i32, i32
  }
  func.func @transform_2(%arg0: i32, %arg1: i32) -> (i32, i32) {
    %c0_i32 = arith.constant 0 : i32
    %c0_i32_0 = arith.constant 0 : i32
    %c0_i32_1 = arith.constant 0 : i32
    return %c0_i32, %c0_i32_0 : i32, i32
  }
  func.func @transform_3(%arg0: i32, %arg1: i32) -> (i32, i32) {
    %c0_i32 = arith.constant 0 : i32
    %c0_i32_0 = arith.constant 0 : i32
    %c0_i32_1 = arith.constant 0 : i32
    return %c0_i32, %c0_i32_0 : i32, i32
  }
  func.func @transform_4(%arg0: i32, %arg1: i32) -> (i32, i32) {
    %c0_i32 = arith.constant 0 : i32
    %c0_i32_0 = arith.constant 0 : i32
    %c0_i32_1 = arith.constant 0 : i32
    return %c0_i32, %c0_i32_0 : i32, i32
  }
  func.func @transform_5(%arg0: i32, %arg1: i32) -> (i32, i32) {
    %c0_i32 = arith.constant 0 : i32
    %c0_i32_0 = arith.constant 0 : i32
    return %arg0, %c0_i32 : i32, i32
  }
}

</mosaic_0001>

<bundles_post_ra>
// kernel: tpu_custom_call.1
= control target key start
LH: loop header
LB: loop body
LE: loop exit
PB: predicated region body
PF: predicated region fallthrough
CT: control target
= control target key end

     0   :  { %10 = vsyncpa [#allocation4], 0  ;;  %s452_s0 = inlined_call_operand.hbm [shape: f32[2,64,256], index: 0, kind: input, shape index: {}]   ;;  %s453_s1 = inlined_call_operand.vmem [shape: f32[64,4], index: 1, kind: input, shape index: {}]   ;;  %s454_s2 = inlined_call_operand.vmem [shape: f32[1,4], index: 2, kind: input, shape index: {}]   ;;  %s455_s3 = inlined_call_operand.vmem [shape: f32[4,64], index: 3, kind: input, shape index: {}]   ;;  %s456_s4 = inlined_call_operand.vmem [shape: f32[1,64], index: 4, kind: input, shape index: {}]   ;;  %s457_s5 = inlined_call_operand.hbm [shape: f32[2,64], index: 5, kind: output, shape index: {}]  }
   0x1   :  { %11 = vsyncpa [#allocation5], 0  ;;  %s16_s20 = sshll.u32 %s452_s0, 4  ;;  %s371_s21 = smov [#allocation3]   ;;  %s17_s20 = int_to_ptr.hbm [resolvable:$true] %s16_s20 }
   0x2   :  { %s18_s22 = sshll.u32 %s371_s21, 4  ;;  %s372_s23 = smov 256   ;;  %s19_s22 = int_to_ptr.vmem [resolvable:$true] %s18_s22 }
   0x3   :  { %s373_s24 = smov 16  }
   0x4   :  { %24 = dma.hbm_to_vmem [thread:$0]  %s17_s20, 4096, %s19_s22, [#allocation4], %s372_s23, %s372_s23, %s373_s24  }
   0x5   :  { %367 = dma.done.wait [#allocation4], 4096  }
   0x6   :  { %368 = vsyncadd [#allocation4], 4294963200  ;;  %v60_v0 = vld [vmem:[#allocation3 + $0x80] sm:$0xff]  ;;  %v61_v1 = vld [vmem:[#allocation3 + $0x88] sm:$0xff]  ;;  %vm41_vm0 = vcmask 517120   ;;  %v374_v51 = vmov 0.0   ;;  %v140_v63 = vlaneseq }
   0x7   :  { %v44_v2 = vld [vmem:[#allocation3] sm:$0xff]  ;;  %v100_v3 = vadd.f32 %v61_v1, %v60_v0  ;;  %v45_v4 = vld [vmem:[#allocation3 + $0x8] sm:$0xff]  ;;  %v62_v9 = vld [vmem:[#allocation3 + $0x90] sm:$0xff]  ;;  %42 = vst.msk [vmem:[#allocation2] sm:$0x3] %vm41_vm0, %v374_v51  ;;  %vm145_vm1 = vcmask 130112  }
   0x8   :  { %v48_v5 = vld [vmem:[#allocation3 + $0x20] sm:$0xff]  ;;  %v49_v6 = vld [vmem:[#allocation3 + $0x28] sm:$0xff]  ;;  %v76_v7 = vadd.f32 %v45_v4, %v44_v2  ;;  %v63_v10 = vld [vmem:[#allocation3 + $0x98] sm:$0xff]  ;;  %v141_v2 = vand.u32 127, %v140_v63  ;;  %vm149_vm2 = vcmask 195712   ;;  %vm153_vm3 = vcmask 261312  }
   0x9   :  { %v82_v8 = vadd.f32 %v49_v6, %v48_v5  ;;  %101 = vadd.xlane.f32.xlu1 %v100_v3  ;;  %v46_v11 = vld [vmem:[#allocation3 + $0x10] sm:$0xff]  ;;  %v47_v12 = vld [vmem:[#allocation3 + $0x18] sm:$0xff]  ;;  %v64_v13 = vld [vmem:[#allocation3 + $0xa0] sm:$0xff]  ;;  %v103_v15 = vadd.f32 %v63_v10, %v62_v9  ;;  %vm157_vm4 = vcmask 326912   ;;  %vm161_vm5 = vcmask 392512  }
   0xa   :  { %77 = vadd.xlane.f32.xlu0 %v76_v7  ;;  %v65_v14 = vld [vmem:[#allocation3 + $0xa8] sm:$0xff]  ;;  %v79_v16 = vadd.f32 %v47_v12, %v46_v11  ;;  %v66_v18 = vld [vmem:[#allocation3 + $0xb0] sm:$0xff]  ;;  %v67_v19 = vld [vmem:[#allocation3 + $0xb8] sm:$0xff]  ;;  %v143_v4 = vadd.s32 4294967288, %v141_v2  ;;  %v147_v7 = vadd.s32 4294967280, %v141_v2  ;;  %v151_v10 = vadd.s32 4294967272, %v141_v2 }
   0xb   :  { %83 = vadd.xlane.f32.xlu2 %v82_v8  ;;  %v106_v17 = vadd.f32 %v65_v14, %v64_v13  ;;  %v50_v20 = vld [vmem:[#allocation3 + $0x30] sm:$0xff]  ;;  %v51_v21 = vld [vmem:[#allocation3 + $0x38] sm:$0xff]  ;;  %v52_v22 = vld [vmem:[#allocation3 + $0x40] sm:$0xff]  ;;  %v109_v24 = vadd.f32 %v67_v19, %v66_v18  ;;  %v159_v18 = vadd.s32 4294967256, %v141_v2  ;;  %vm165_vm6 = vcmask 458112  }
   0xc   :  { %v53_v23 = vld [vmem:[#allocation3 + $0x48] sm:$0xff]  ;;  %v85_v25 = vadd.f32 %v51_v21, %v50_v20  ;;  %v54_v27 = vld [vmem:[#allocation3 + $0x50] sm:$0xff]  ;;  %v55_v28 = vld [vmem:[#allocation3 + $0x58] sm:$0xff]  ;;  %v163_v20 = vadd.s32 4294967248, %v141_v2  ;;  %vm169_vm7 = vcmask 523712   ;;  %vm186_vm8 = vcmask 1041409  }
   0xd   :  { %v88_v26 = vadd.f32 %v53_v23, %v52_v22  ;;  %v68_v29 = vld [vmem:[#allocation3 + $0xc0] sm:$0xff]  ;;  %v69_v30 = vld [vmem:[#allocation3 + $0xc8] sm:$0xff]  ;;  %v70_v31 = vld [vmem:[#allocation3 + $0xd0] sm:$0xff]  ;;  %v91_v33 = vadd.f32 %v55_v28, %v54_v27  ;;  %vm209_vm9 = vcmask 523264   ;;  %vm243_vm10 = vcmask 1043456  }
   0xe   :  { %v71_v32 = vld [vmem:[#allocation3 + $0xd8] sm:$0xff]  ;;  %v112_v34 = vadd.f32 %v69_v30, %v68_v29  ;;  %v72_v36 = vld [vmem:[#allocation3 + $0xe0] sm:$0xff]  ;;  %v73_v37 = vld [vmem:[#allocation3 + $0xe8] sm:$0xff]  ;;  %v167_v30 = vadd.s32 4294967240, %v141_v2  ;;  %vm239_vm11 = vcmask 31744  }
   0xf   :  { %v115_v35 = vadd.f32 %v71_v32, %v70_v31  ;;  %v56_v38 = vld [vmem:[#allocation3 + $0x60] sm:$0xff]  ;;  %v57_v39 = vld [vmem:[#allocation3 + $0x68] sm:$0xff]  ;;  %v58_v40 = vld [vmem:[#allocation3 + $0x70] sm:$0xff]  ;;  %v118_v42 = vadd.f32 %v73_v37, %v72_v36 }
  0x10   :  { %v59_v41 = vld [vmem:[#allocation3 + $0x78] sm:$0xff]  ;;  %v94_v43 = vadd.f32 %v57_v39, %v56_v38  ;;  %v74_v45 = vld [vmem:[#allocation3 + $0xf0] sm:$0xff]  ;;  %v202_v57 = vld [vmem:[%s453_s1 + $0x28] sm:$0xff] }
  0x11   :  { %104 = vadd.xlane.f32.xlu1 %v103_v15  ;;  %v97_v44 = vadd.f32 %v59_v41, %v58_v40  ;;  %v75_v46 = vld [vmem:[#allocation3 + $0xf8] sm:$0xff]  ;;  %v203_v56 = vld [vmem:[%s453_s1 + $0x30] sm:$0xff]  ;;  %v198_v1 = vld [vmem:[%s453_s1 + $0x8] sm:$0xff]  ;;  %v155_v15 = vadd.s32 4294967264, %v141_v2 }
  0x12   :  { %80 = vadd.xlane.f32.xlu0 %v79_v16  ;;  %v121_v47 = vadd.f32 %v75_v46, %v74_v45  ;;  %v204_v55 = vld [vmem:[%s453_s1 + $0x38] sm:$0xff]  ;;  %v201_v59 = vld [vmem:[%s453_s1 + $0x20] sm:$0xff]  ;;  %v199_v0 = vld [vmem:[%s453_s1 + $0x10] sm:$0xff] }
  0x13   :  { %107 = vadd.xlane.f32.xlu2 %v106_v17  ;;  %221 = vmatpush.msra.mxu0 %v204_v55  ;;  %v200_v60 = vld [vmem:[%s453_s1 + $0x18] sm:$0xff]  ;;  %v197_v3 = vld [vmem:[%s453_s1] sm:$0xff] }
  0x14   :  { %v43_v46 = vld [vmem:[#allocation2] sm:$0x3] }
  0x15   :  { %222 = vmatpush.msra.mxu0 %v203_v56 }
  0x17   :  { %223 = vmatpush.msra.mxu0 %v202_v57 }
  0x19   :  { %110 = vadd.xlane.f32.xlu1 %v109_v24  ;;  %224 = vmatpush.msra.mxu0 %v201_v59 }
  0x1a   :  { %86 = vadd.xlane.f32.xlu0 %v85_v25 }
  0x1b   :  { %89 = vadd.xlane.f32.xlu2 %v88_v26  ;;  %225 = vmatpush.msra.mxu0 %v200_v60 }
  0x1d   :  { %226 = vmatpush.msra.mxu0 %v199_v0 }
  0x1f   :  { %227 = vmatpush.msra.mxu0 %v198_v1 }
  0x21   :  { %92 = vadd.xlane.f32.xlu1 %v91_v33  ;;  %228 = vmatpush.msra.mxu0 %v197_v3 }
  0x22   :  { %113 = vadd.xlane.f32.xlu0 %v112_v34 }
  0x23   :  { %116 = vadd.xlane.f32.xlu2 %v115_v35 }
  0x29   :  { %119 = vadd.xlane.f32.xlu1 %v118_v42 }
  0x2a   :  { %95 = vadd.xlane.f32.xlu0 %v94_v43 }
  0x2b   :  { %98 = vadd.xlane.f32.xlu2 %v97_v44 }
  0x32   :  { %122 = vadd.xlane.f32.xlu0 %v121_v47 }
  0x7c   :  { %v102_v48 = vpop.xlane.xlu1 %101 }
  0x7d   :  { %v78_v49 = vpop.xlane.xlu0 %77  ;;  %v171_v11 = vperm.slane %v102_v48, %v141_v2 }
  0x7e   :  { %v84_v50 = vpop.xlane.xlu2 %83  ;;  %v142_v12 = vperm.slane %v78_v49, %v141_v2 }
  0x7f   :  { %v148_v14 = vperm.slane %v84_v50, %v147_v7 }
  0x84   :  { %v105_v52 = vpop.xlane.xlu1 %104 }
  0x85   :  { %v81_v53 = vpop.xlane.xlu0 %80  ;;  %v172_v13 = vperm.slane %v105_v52, %v143_v4 }
  0x86   :  { %v108_v54 = vpop.xlane.xlu2 %107  ;;  %v144_v9 = vperm.slane %v81_v53, %v143_v4  ;;  %v234_v53 = vld [vmem:[%s455_s3] sm:$0xf] }
  0x87   :  { %v174_v19 = vperm.slane %v108_v54, %v147_v7  ;;  %v173_v22 = vsel %vm145_vm1, %v172_v13, %v171_v11  ;;  %305 = vmatpush.msk.msra.mxu1 %vm243_vm10, %v234_v53  ;;  %v313_v54 = vld [vmem:[%s454_s2] ss:$0 sm:$0xff]  ;;  %s375_s2 = smov [#allocation6]  }
  0x88   :  { %v146_v16 = vsel %vm145_vm1, %v144_v9, %v142_v12  ;;  %s292_s3 = sshll.u32 %s375_s2, 4  ;;  %s293_s3 = int_to_ptr.vmem [resolvable:$true] %s292_s3 }
  0x89   :  { %v150_v24 = vsel %vm149_vm2, %v148_v14, %v146_v16  ;;  %v175_v31 = vsel %vm149_vm2, %v174_v19, %v173_v22 }
  0x8c   :  { %v111_v58 = vpop.xlane.xlu1 %110 }
  0x8d   :  { %v87_v61 = vpop.xlane.xlu0 %86  ;;  %v176_v23 = vperm.slane %v111_v58, %v151_v10  ;;  %v314_v58 = vld [vmem:[%s456_s4] ss:$0 sm:$0xff]  ;;  %s294_s4 = sshll.u32 %s457_s5, 4  ;;  %s295_s4 = int_to_ptr.hbm [resolvable:$true] %s294_s4 }
  0x8e   :  { %v90_v62 = vpop.xlane.xlu2 %89  ;;  %v152_v17 = vperm.slane %v87_v61, %v151_v10 }
  0x8f   :  { %v156_v25 = vperm.slane %v90_v62, %v155_v15  ;;  %v177_v34 = vsel %vm153_vm3, %v176_v23, %v175_v31 }
  0x90   :  { %v154_v27 = vsel %vm153_vm3, %v152_v17, %v150_v24 }
  0x91   :  { %v158_v36 = vsel %vm157_vm4, %v156_v25, %v154_v27 }
  0x94   :  { %v93_v6 = vpop.xlane.xlu1 %92 }
  0x95   :  { %v114_v5 = vpop.xlane.xlu0 %113  ;;  %v160_v28 = vperm.slane %v93_v6, %v159_v18 }
  0x96   :  { %v117_v8 = vpop.xlane.xlu2 %116  ;;  %v178_v26 = vperm.slane %v114_v5, %v155_v15 }
  0x97   :  { %v180_v35 = vperm.slane %v117_v8, %v159_v18  ;;  %v162_v39 = vsel %vm161_vm5, %v160_v28, %v158_v36 }
  0x98   :  { %v179_v37 = vsel %vm157_vm4, %v178_v26, %v177_v34 }
  0x99   :  { %v181_v43 = vsel %vm161_vm5, %v180_v35, %v179_v37 }
  0x9c   :  { %v120_v29 = vpop.xlane.xlu1 %119 }
  0x9d   :  { %v96_v21 = vpop.xlane.xlu0 %95  ;;  %v182_v38 = vperm.slane %v120_v29, %v163_v20 }
  0x9e   :  { %v164_v32 = vperm.slane %v96_v21, %v163_v20  ;;  %v99_v33 = vpop.xlane.xlu2 %98 }
  0x9f   :  { %v168_v40 = vperm.slane %v99_v33, %v167_v30  ;;  %v183_v45 = vsel %vm165_vm6, %v182_v38, %v181_v43 }
  0xa0   :  { %v166_v41 = vsel %vm165_vm6, %v164_v32, %v162_v39 }
  0xa1   :  { %v170_v47 = vsel %vm169_vm7, %v168_v40, %v166_v41 }
  0xa5   :  { %v123_v42 = vpop.xlane.xlu0 %122 }
  0xa6   :  { %v184_v44 = vperm.slane %v123_v42, %v167_v30 }
  0xa8   :  { %v185_v48 = vsel %vm169_vm7, %v184_v44, %v183_v45 }
  0xa9   :  { %v187_v49 = vsel %vm186_vm8, %v185_v48, %v170_v47 }
  0xaa   :  { %v189_v50 = vadd.f32 %v187_v49, %v43_v46 }
  0xac   :  { %191 = vst.msk [vmem:[#allocation2] sm:$0x3] %vm41_vm0, %v189_v50 }
  0xb3   :  { %v195_v51 = vld [vmem:[#allocation2] sm:$0x3] }
  0xb4   :  { %v196_v52 = vmul.f32 0.00390625, %v195_v51 }
  0xb6   :  { %304 = vmatmul.msk.f32.vlgmr.msra.gmra.mxu0 %vm209_vm9, %v196_v52 }
 0x133   :  { %v230_v55 = vpop.f32.mrf.mxu0 }
 0x134   :  { %v231_v56 = vadd.f32 %v313_v54, %v230_v55 }
 0x136   :  { %v233_v57 = vmax.f32 %v231_v56, 0.0 }
 0x138   :  { %306 = vmatmul.msk.f32.vlgmr.msra.gmra.mxu1 %vm239_vm11, %v233_v57 }
 0x1b5   :  { %v264_v59 = vpop.f32.mrf.mxu1 }
 0x1b6   :  { %v265_v60 = vadd.f32 %v314_v58, %v264_v59 }
 0x1b8   :  { %v307_v61 = vmul.f32 -1.442695, %v265_v60 }
 0x1ba   :  { %315 = vpow2.f32 %v307_v61 }
 0x1c0   :  { %v316_v62 = vpop.eup %315 }
 0x1c1   :  { %v270_v63 = vadd.f32 1.0, %v316_v62 }
 0x1c3   :  { %317 = vrcp.f32 %v270_v63  ;;  %v282_v3 = vand.u32 2147483648, %v270_v63  ;;  %v280_v5 = vand.u32 2147483647, %v270_v63  ;;  %vm276_vm13 = vweird.f32 %v270_v63 }
 0x1c5   :  { %v283_v7 = vor.u32 1.1754944e-38, %v282_v3  ;;  %vm281_vm15 = vcmp.eq.f32.partialorder %v280_v5, 8.507059e+37 }
 0x1c9   :  { %v318_v0 = vpop.eup %317 }
 0x1ca   :  { %v272_v1 = vmul.f32 %v318_v0, %v270_v63  ;;  %vm277_vm12 = vweird.f32 %v318_v0 }
 0x1cb   :  { %vm278_vm14 = vmor %vm276_vm13, %vm277_vm12 }
 0x1cc   :  { %v273_v2 = vsub.f32 1.0, %v272_v1 }
 0x1ce   :  { %v274_v4 = vmul.f32 %v318_v0, %v273_v2 }
 0x1d0   :  { %v275_v6 = vadd.f32 %v318_v0, %v274_v4 }
 0x1d2   :  { %v279_v8 = vsel %vm278_vm14, %v318_v0, %v275_v6 }
 0x1d3   :  { %v284_v9 = vsel %vm281_vm15, %v283_v7, %v279_v8 }
 0x1d4   :  { %286 = vst.msk [vmem:[#allocation6] sm:$0x3] %vm41_vm0, %v284_v9 }
 0x1d5   :  { %297 = dma.vmem_to_hbm [thread:$0]  %s293_s3, 32, %s295_s4, [#allocation5]  }
 0x1d6   :  { %369 = dma.done.wait [#allocation5], 32  }
 0x1d7   :  { %370 = vsyncadd [#allocation5], 4294967264 }
 0x1d8   :  { %302 = vsyncpa [#allocation4], 1 }
 0x1d9   :  { %303 = vsyncpa [#allocation5], 1 }

</bundles_post_ra>
